<compile_context>
chip_gen: v7x
topology: tpu7x:2x2x1
jax: 0.10.0
libtpu: 0.0.40
codegen_flags: <defaults>
</compile_context>

<pallas_src>
import math

import jax
import jax.numpy as jnp
from jax.experimental import pallas as pl
from jax.experimental.pallas import tpu as pltpu

HIDDEN = 32        # hp.hidden
NUM_INPUTS = 8     # num_inputs
TILE_B = 128       # lane-dense batch tile (multiple of 128)

# Packed-parameter slab layout, lane width = HIDDEN = 32 (torch (out, in) layout):
W2_ROW = 0                     # rows [ 0, 32), cols [0,32) : fc2.weight (H, H)
W1_ROW = HIDDEN                # rows [32, 64), cols [0, 8) : fc1.weight (H, IN)
B1_COL = NUM_INPUTS            # rows [32, 64), col 8       : fc1.bias   (H,) as a column
B2_COL = NUM_INPUTS + 1        # rows [32, 64), col 9       : fc2.bias   (H,) as a column
W3_ROW = 2 * HIDDEN            # row 64,        cols [0,32) : fc3.weight (1, H)
B3_ROW = W3_ROW + 1            # row 65,        col 0       : fc3.bias
SLAB_ROWS = ((B3_ROW + 1 + 7) // 8) * 8   # 72 rows (sublane-aligned)


def critic_kernel(x_ref, p_ref, v_ref):
    xt = x_ref[...]                                              # (IN, TILE_B)

    # Static slices of the resident parameter slab (tiny, within one lane tile).
    w2 = p_ref[W2_ROW:W2_ROW + HIDDEN, :]                        # (H, H)
    w1 = p_ref[W1_ROW:W1_ROW + HIDDEN, 0:NUM_INPUTS]             # (H, IN)
    b1 = p_ref[W1_ROW:W1_ROW + HIDDEN, B1_COL:B1_COL + 1]        # (H, 1)
    b2 = p_ref[W1_ROW:W1_ROW + HIDDEN, B2_COL:B2_COL + 1]        # (H, 1)
    w3 = p_ref[W3_ROW:W3_ROW + 1, :]                             # (1, H)
    b3 = p_ref[B3_ROW:B3_ROW + 1, 0:1]                           # (1, 1)

    # Transposed pipeline: activations are (H, TILE_B), batch on the lane axis.
    h1 = jnp.tanh(jnp.dot(w1, xt, preferred_element_type=jnp.float32) + b1)   # (H, B)
    h2 = jnp.tanh(jnp.dot(w2, h1, preferred_element_type=jnp.float32) + b2)   # (H, B)
    v_ref[...] = jnp.dot(w3, h2, preferred_element_type=jnp.float32) + b3     # (1, B)


def critic_forward(x, packed_params, *, tile_b=TILE_B):
    """x: (B, NUM_INPUTS) f32, packed_params: (SLAB_ROWS, HIDDEN) f32 -> (B, 1)."""
    B = x.shape[0]
    num_tiles = pl.cdiv(B, tile_b)
    b_pad = num_tiles * tile_b

    # Layout plumbing (outside the kernel): batch on the lane axis, padded to a
    # multiple of the 128-wide batch tile.
    x_t = jnp.transpose(x)                                       # (IN, B)
    if b_pad != B:
        x_t = jnp.pad(x_t, ((0, 0), (0, b_pad - B)))

    grid_spec = pltpu.PrefetchScalarGridSpec(
        num_scalar_prefetch=0,
        grid=(num_tiles,),
        in_specs=[
            # Activation stream: (IN, TILE_B) blocks, double-buffered by Pallas.
            pl.BlockSpec((NUM_INPUTS, tile_b), lambda i: (0, i)),
            # Parameter slab: invariant index_map -> DMA'd once, stays resident.
            pl.BlockSpec((SLAB_ROWS, HIDDEN), lambda i: (0, 0)),
        ],
        out_specs=pl.BlockSpec((1, tile_b), lambda i: (0, i)),    # lane-dense row
    )

    flops = 2 * b_pad * (NUM_INPUTS * HIDDEN + HIDDEN * HIDDEN + HIDDEN)
    transcendentals = 2 * b_pad * HIDDEN
    bytes_accessed = 4 * (b_pad * NUM_INPUTS + SLAB_ROWS * HIDDEN + b_pad)

    v_row = pl.pallas_call(
        critic_kernel,
        out_shape=jax.ShapeDtypeStruct((1, b_pad), jnp.float32),
        grid_spec=grid_spec,
        compiler_params=pltpu.CompilerParams(
            dimension_semantics=("parallel",),
        ),
        cost_estimate=pl.CostEstimate(
            flops=flops,
            transcendentals=transcendentals,
            bytes_accessed=bytes_accessed,
        ),
    )(x_t, packed_params)

    # (1, B) -> (B, 1): pure layout plumbing, same row-major data order.
    return v_row[0, :B].reshape(B, 1)


def xavier_uniform(key, out_features, in_features, gain=1.0):
    # Matches torch.nn.init.xavier_uniform_ on a torch-layout (out, in) weight.
    bound = gain * math.sqrt(6.0 / (in_features + out_features))
    return jax.random.uniform(
        key, (out_features, in_features), dtype=jnp.float32,
        minval=-bound, maxval=bound,
    )


def init_params(key):
    """Parameters in PyTorch nn.Linear layout: weight (out, in), bias (out,)."""
    k1, k2, k3 = jax.random.split(key, 3)
    w1 = xavier_uniform(k1, HIDDEN, NUM_INPUTS)      # (H, IN)
    b1 = jnp.zeros((HIDDEN,), jnp.float32)
    w2 = xavier_uniform(k2, HIDDEN, HIDDEN)          # (H, H)
    b2 = jnp.zeros((HIDDEN,), jnp.float32)
    w3 = xavier_uniform(k3, 1, HIDDEN)               # (1, H)
    b3 = jnp.zeros((1,), jnp.float32)
    return (w1, b1, w2, b2, w3, b3)


def pack_params(params):
    """Pack all six torch-layout parameters into one [SLAB_ROWS, HIDDEN] f32 slab."""
    w1, b1, w2, b2, w3, b3 = params
    slab = jnp.zeros((SLAB_ROWS, HIDDEN), jnp.float32)
    slab = slab.at[W2_ROW:W2_ROW + HIDDEN, :].set(w2)
    slab = slab.at[W1_ROW:W1_ROW + HIDDEN, 0:NUM_INPUTS].set(w1)
    slab = slab.at[W1_ROW:W1_ROW + HIDDEN, B1_COL].set(b1)
    slab = slab.at[W1_ROW:W1_ROW + HIDDEN, B2_COL].set(b2)
    slab = slab.at[W3_ROW, :].set(w3[0, :])
    slab = slab.at[B3_ROW, 0].set(b3[0])
    return slab


def critic_reference(x, params):
    """Pure-JAX reference matching torch: tanh(fc1) -> tanh(fc2) -> fc3."""
    w1, b1, w2, b2, w3, b3 = params
    h1 = jnp.tanh(x @ w1.T + b1[None, :])
    h2 = jnp.tanh(h1 @ w2.T + b2[None, :])
    return h2 @ w3.T + b3[None, :]


if __name__ == "__main__":
    key = jax.random.PRNGKey(0)
    kx, kp = jax.random.split(key)
    params = init_params(kp)
    slab = pack_params(params)

    # Two small cases: one spanning multiple grid steps + padding (200 -> 256),
    # one tiny batch exercising the single-padded-tile path.
    for batch in (200, 2):
        xb = jax.random.normal(
            jax.random.fold_in(kx, batch), (batch, NUM_INPUTS), dtype=jnp.float32
        )
        v = jax.block_until_ready(critic_forward(xb, slab))
        v_ref = critic_reference(xb, params)
        assert v.shape == (batch, 1)
        assert jnp.allclose(v, v_ref, atol=1e-5, rtol=1e-5), (
            f"mismatch vs JAX reference at batch={batch}"
        )

    print("KERNEL_OK")
</pallas_src>

<mosaic_0001>
module attributes {stable_mosaic.version = 11 : i64} {
  func.func @critic_kernel(%arg0: i32, %arg1: memref<8x128xf32, #tpu.memory_space<vmem>>, %arg2: memref<72x32xf32, #tpu.memory_space<vmem>>, %arg3: memref<1x128xf32, #tpu.memory_space<vmem>>) attributes {dimension_semantics = [#tpu.dimension_semantics<parallel>], iteration_bounds = array<i64: 2>, scalar_prefetch = 0 : i64, scratch_operands = 0 : i64, tpu.core_type = #tpu.core_type<tc>, window_params = [{transform_indices = @transform_0, window_bounds = array<i64: 8, 128>}, {pipeline_mode = #tpu.pipeline_mode<synchronous>, transform_indices = @transform_1, window_bounds = array<i64: 72, 32>}, {transform_indices = @transform_2, window_bounds = array<i64: 1, 128>}]} {
    %c0 = arith.constant 0 : index
    %c0_0 = arith.constant 0 : index
    %0 = vector.load %arg1[%c0, %c0_0] : memref<8x128xf32, #tpu.memory_space<vmem>>, vector<8x128xf32>
    %c0_1 = arith.constant 0 : index
    %c0_2 = arith.constant 0 : index
    %1 = vector.load %arg2[%c0_1, %c0_2] : memref<72x32xf32, #tpu.memory_space<vmem>>, vector<32x32xf32>
    %c32 = arith.constant 32 : index
    %c0_3 = arith.constant 0 : index
    %2 = vector.load %arg2[%c32, %c0_3] : memref<72x32xf32, #tpu.memory_space<vmem>>, vector<32x8xf32>
    %c32_4 = arith.constant 32 : index
    %c8 = arith.constant 8 : index
    %3 = vector.load %arg2[%c32_4, %c8] : memref<72x32xf32, #tpu.memory_space<vmem>>, vector<32x1xf32>
    %c32_5 = arith.constant 32 : index
    %c9 = arith.constant 9 : index
    %4 = vector.load %arg2[%c32_5, %c9] : memref<72x32xf32, #tpu.memory_space<vmem>>, vector<32x1xf32>
    %c64 = arith.constant 64 : index
    %c0_6 = arith.constant 0 : index
    %5 = vector.load %arg2[%c64, %c0_6] : memref<72x32xf32, #tpu.memory_space<vmem>>, vector<1x32xf32>
    %c65 = arith.constant 65 : index
    %c0_7 = arith.constant 0 : index
    %6 = vector.load %arg2[%c65, %c0_7] : memref<72x32xf32, #tpu.memory_space<vmem>>, vector<1x1xf32>
    %cst = arith.constant dense<0.000000e+00> : vector<32x128xf32>
    %7 = tpu.matmul %2, %0, %cst {dimension_numbers = #tpu.dot_dimension_numbers<[1], [0], [0], [1], [0, 0, 1, 1], [], []>} : vector<32x8xf32>, vector<8x128xf32>, vector<32x128xf32> -> vector<32x128xf32>
    %8 = vector.broadcast %3 : vector<32x1xf32> to vector<32x128xf32>
    %9 = arith.addf %7, %8 : vector<32x128xf32>
    %10 = math.tanh %9 : vector<32x128xf32>
    %cst_8 = arith.constant dense<0.000000e+00> : vector<32x128xf32>
    %11 = tpu.matmul %1, %10, %cst_8 {dimension_numbers = #tpu.dot_dimension_numbers<[1], [0], [0], [1], [0, 0, 1, 1], [], []>} : vector<32x32xf32>, vector<32x128xf32>, vector<32x128xf32> -> vector<32x128xf32>
    %12 = vector.broadcast %4 : vector<32x1xf32> to vector<32x128xf32>
    %13 = arith.addf %11, %12 : vector<32x128xf32>
    %14 = math.tanh %13 : vector<32x128xf32>
    %cst_9 = arith.constant dense<0.000000e+00> : vector<1x128xf32>
    %15 = tpu.matmul %5, %14, %cst_9 {dimension_numbers = #tpu.dot_dimension_numbers<[1], [0], [0], [1], [0, 0, 1, 1], [], []>} : vector<1x32xf32>, vector<32x128xf32>, vector<1x128xf32> -> vector<1x128xf32>
    %16 = vector.broadcast %6 : vector<1x1xf32> to vector<1x128xf32>
    %17 = arith.addf %15, %16 : vector<1x128xf32>
    %c0_10 = arith.constant 0 : index
    %c0_11 = arith.constant 0 : index
    %18 = vector.load %arg3[%c0_10, %c0_11] : memref<1x128xf32, #tpu.memory_space<vmem>>, vector<1x128xf32>
    tpu.vector_store %arg3[%c0_10, %c0_11], %17 {strides = array<i32>} : memref<1x128xf32, #tpu.memory_space<vmem>>, vector<1x128xf32>,
    return
  }
  func.func @transform_0(%arg0: i32) -> (i32, i32) {
    %c0_i32 = arith.constant 0 : i32
    %c0_i32_0 = arith.constant 0 : i32
    return %c0_i32, %arg0 : i32, i32
  }
  func.func @transform_1(%arg0: i32) -> (i32, i32) {
    %c0_i32 = arith.constant 0 : i32
    %c0_i32_0 = arith.constant 0 : i32
    %c0_i32_1 = arith.constant 0 : i32
    return %c0_i32, %c0_i32_0 : i32, i32
  }
  func.func @transform_2(%arg0: i32) -> (i32, i32) {
    %c0_i32 = arith.constant 0 : i32
    %c0_i32_0 = arith.constant 0 : i32
    return %c0_i32, %arg0 : i32, i32
  }
}

</mosaic_0001>

<bundles_post_ra>
// kernel: tpu_custom_call.1
= control target key start
LH: loop header
LB: loop body
LE: loop exit
PB: predicated region body
PF: predicated region fallthrough
CT: control target
= control target key end

     0   :  { %7 = vsyncpa [#allocation3], 0  ;;  %s906_s0 = inlined_call_operand.vmem [shape: f32[8,256], index: 0, kind: input, shape index: {}]   ;;  %s907_s1 = inlined_call_operand.vmem [shape: f32[72,32], index: 1, kind: input, shape index: {}]   ;;  %s908_s2 = inlined_call_operand.hbm [shape: f32[1,256], index: 2, kind: output, shape index: {}]  }
   0x1   :  { %9 = vsyncpa [#allocation3 + $0x1], 0  ;;  %s767_s9 = smov 0   ;;  %s769_s10 = smov 0  }
   0x2   :  { %s771_s11 = smov 0   ;;  %s773_s12 = smov 0  }
   0x3 LB: > { %s788_s13 = sadd.s32 4294967295, %s743_s12   ;;  %s532_s14 = sadd.s32 4294967294, %s743_s12   ;;  %s743_s12 = sphi %s773_s12, %s914_s12   ;;  %s739_s11 = sphi %s771_s11, %s913_s11   ;;  %s735_s10 = sphi %s769_s10, %s912_s10   ;;  %s731_s9 = sphi %s767_s9, %s911_s9  }
   0x4   : > { %s792_s15 = sadd.s32 1, %s743_s12   ;;  %s69_s16 = sadd.s32 1, %s739_s11 }
   0x5   : > { %s66_s17 = ssub.s32 %s743_s12, %s792_s15  ;;  %p79_p0 = scmp.ne.s32.totalorder %s739_s11, %s735_s10 }
   0x6   : > { %p67_p1 = scmp.eq.s32.totalorder %s66_s17, 0  ;;  %p80_p2 = scmp.eq.s32.totalorder %s788_s13, 1 }
   0x7   : > { %p85_p3 = scmp.ne.s32.totalorder %s735_s10, %s731_s9  ;;  %p86_p4 = scmp.eq.s32.totalorder %s532_s14, 1 }
   0x8   : > { %s803_s18 = scalar_select %p67_p1, %s739_s11, %s69_s16  }
   0x9   : > { %p805_p5 = por %p80_p2, %p79_p0  ;;  %p809_p6 = por %p86_p4, %p85_p3 }
   0xa   : > { %p535_p7 = scmp.ge.s32.totalorder %s743_s12, 1  ;;  %p114_p8 = scmp.lt.s32.totalorder %s743_s12, 3 }
   0xc   : > { %p115_p9 = pnand %p535_p7, %p114_p8 }
   0xd   : > { %p134_p10 = scmp.lt.s32.totalorder (!%p115_p9), %s788_s13, 1  ;;  %v143_v0 = vld [vmem:[%s907_s1 + $0x20] sm:$0xff] (!%p115_p9)  ;;  %vm169_vm0 = vcmask (!%p115_p9), 64512   ;;  %v745_v1 = vmov (!%p115_p9), 8   ;;  %v145_v2 = vld [vmem:[%s907_s1 + $0x30] sm:$0xff] (!%p115_p9)  ;;  %v144_v3 = vld [vmem:[%s907_s1 + $0x28] sm:$0xff] (!%p115_p9) }
   0xe   : > { %118 = sbr.rel (%p115_p9) target bundleno = 727 (0x2d7), region = 28  ;;  %569 = vmatprep.mubr.msk.f32.mxu0 (!%p115_p9), %vm169_vm0, %v143_v0  ;;  %659 = vset.pattern.permute.xlu0 (!%p115_p9), %v745_v1  ;;  %v146_v5 = vld [vmem:[%s907_s1 + $0x38] sm:$0xff] (!%p115_p9)  ;;  %v139_v6 = vld [vmem:[%s907_s1] sm:$0xff] (!%p115_p9)  ;;  %vm283_vm1 = vcmask (!%p115_p9), 261120   ;;  %v746_v7 = vmov (!%p115_p9), 9   ;;  %v140_v26 = vld [vmem:[%s907_s1 + $0x8] sm:$0xff] (!%p115_p9) }
   0xf   : > { %151 = vperm.xlu0 (!%p115_p9), %659, %v143_v0   ;;  %660 = vset.pattern.permute.xlu1 (!%p115_p9), %v745_v1  ;;  %v141_v27 = vld [vmem:[%s907_s1 + $0x10] sm:$0xff] (!%p115_p9)  ;;  %v142_v28 = vld [vmem:[%s907_s1 + $0x18] sm:$0xff] (!%p115_p9)  ;;  %v747_v29 = vmov (!%p115_p9), 0.0|0.0   ;;  %vm748_vm2 = vmmov (!%p115_p9), 0   ;;  %v749_v30 = vmov (!%p115_p9), 0.0   ;;  %v750_v32 = vmov (!%p115_p9), 0  }
  0x10   : > { %161 = vperm.xlu1 (!%p115_p9), %660, %v145_v2   ;;  %583 = vmatprep.mubr.msk.f32.mxu1 (!%p115_p9), %vm283_vm1, %v139_v6  ;;  %v148_v31 = vld [vmem:[%s907_s1 + $0x41] sm:$0x1] (!%p115_p9)  ;;  %v147_v51 = vld [vmem:[%s907_s1 + $0x40] sm:$0x1] (!%p115_p9)  ;;  %s132_s27 = sand.u32 (!%p115_p9), 1, %s735_s10   ;;  %s546_s28 = sshll.u32 (!%p115_p9), %s788_s13, 4 }
  0x11   : > { %s864_s5 = scalar_lea.hbm (!%p115_p9), %s908_s2, %s546_s28  ;;  %s465_s6 = scalar_lea.sflag (!%p115_p9), [#allocation3], %s132_s27 }
  0x13   : > { %156 = vperm.xlu0 (!%p115_p9), %659, %v144_v3  }
  0x14   : > { %166 = vperm.xlu1 (!%p115_p9), %660, %v146_v5  }
  0x15   : > { %s135_s23 = scalar_select %p134_p10, %s788_s13, 1 }
  0x16   : > { %s751_s13 = smov [#allocation2]  }
  0x17   : > { %s536_s26 = sshll.u32 %s135_s23, 3  ;;  %661 = vset.pattern.permute.xlu0 %v746_v7  ;;  %s685_s8 = sshll.u32 %s751_s13, 4  ;;  %s686_s8 = int_to_ptr.vmem [resolvable:$false] %s685_s8 }
  0x18   : > { %s137_s29 = scalar_lea.vmem %s906_s0, %s536_s26  ;;  %662 = vset.pattern.permute.xlu1 %v746_v7  ;;  %268 = vperm.xlu0 %661, %v143_v0   ;;  %s687_s14 = scalar_lea.vmem %s686_s8, 32 }
  0x19   : > { %v138_v4 = vld [vmem:[%s137_s29] sm:$0xff]  ;;  %272 = vperm.xlu1 %662, %v144_v3   ;;  %s133_s29 = scalar_lea.vmem [#allocation2], %s132_s27 }
  0x1a   : > { %567 = vmatprep.subr.mxu0 %v138_v4  ;;  %s477_s30 = sshll.u32 %s133_s29, 4  ;;  %s866_s30 = int_to_ptr.vmem [resolvable:$true] %s477_s30 }
  0x1b   : > { %568 = vmatpush3.msra.mxu0 %v138_v4  ;;  %s681_s7 = scalar_lea.vmem %s866_s30, 16  ;;  %p688_p0 = scmp.lt.s32.totalorder %s866_s30, %s686_s8 }
  0x1c   : > { %570 = vmatmul.mubr.msk.f32.vlgmr.msra.gmra.mrb[0].mxu0 %vm169_vm0, %v144_v3  ;;  %280 = vperm.xlu0 %661, %v146_v5   ;;  %p682_p11 = scmp.ne.s32.totalorder %s866_s30, %s681_s7  ;;  %p689_p1 = scmp.lt.s32.totalorder %s687_s14, %s681_s7 }
  0x1d   : > { %572 = vmatprep.mubr.msk.f32.mxu0 %vm169_vm0, %v145_v2  ;;  %276 = vperm.xlu1 %662, %v145_v2  }
  0x1e   : > { %608 = vmatprep.subr.bf16.mxu0 %v747_v29  ;;  %p683_p12 = pnand %p682_p11, %p805_p5  ;;  %p690_p2 = por %p689_p1, %p688_p0 }
  0x20   : > { %573 = vmatmul.mubr.msk.f32.gmra.mrb[2].mxu0 %vm169_vm0, %v146_v5  ;;  %664 = vset.pattern.permute.xlu0 %v750_v32  ;;  %p684_p13 = pneg %p683_p12 }
  0x21   : > { %597 = vmatprep.mubr.msk.f32.mxu0 %vm748_vm2, %v749_v30  ;;  %663 = vset.pattern.permute.xlu1 %v750_v32 }
  0x22   : > { %387 = vperm.xlu1 %663, %v148_v31   ;;  %p691_p3 = pnand %p690_p2, %p684_p13 }
  0x8e   : > { %v152_v8 = vpop.permute.xlu0 %151 }
  0x8f   : > { %v162_v9 = vpop.permute.xlu1 %161 }
  0x92   : > { %v157_v10 = vpop.permute.xlu0 %156 }
  0x93   : > { %v167_v15 = vpop.permute.xlu1 %166 }
  0x97   : > { %v269_v33 = vpop.permute.xlu0 %268 }
  0x98   : > { %v273_v34 = vpop.permute.xlu1 %272 }
  0x9b   : > { %v281_v39 = vpop.permute.xlu0 %280 }
  0x9c   : > { %v277_v41 = vpop.permute.xlu1 %276 }
  0xa1   : > { %v388_v52 = vpop.permute.xlu1 %387 }
  0xef   : > { %v571_v11 = vpop.f32.mrb[0].mxu0 }
  0xf0   : > { %v250_v12 = vadd.f32 %v571_v11, %v157_v10  ;;  %v244_v13 = vpop.f32.mrb[1].mxu0 }
  0xf1   : > { %v245_v14 = vadd.f32 %v244_v13, %v152_v8 }
  0xf2   : > { %665 = vtanh.f32 %v250_v12 }
  0xf3   : > { %667 = vtanh.f32 %v245_v14  ;;  %v574_v16 = vpop.f32.mrb[2].mxu0 }
  0xf4   : > { %v260_v17 = vadd.f32 %v574_v16, %v167_v15  ;;  %v254_v18 = vpop.f32.mrb[3].mxu0 }
  0xf5   : > { %v255_v19 = vadd.f32 %v254_v18, %v162_v9 }
  0xf6   : > { %669 = vtanh.f32 %v260_v17 }
  0xf7   : > { %671 = vtanh.f32 %v255_v19 }
  0xfc   : > { %v666_v20 = vpop.eup %665 }
  0xfd   : > { %v668_v21 = vpop.eup %667 }
  0xfe   : > { %v600_v22 = vpack.c.bf16 %v666_v20, %v668_v21 }
 0x100   : > { %v670_v23 = vpop.eup %669  ;;  %601 = vmatprep.subr.bf16.mxu1 %v600_v22 }
 0x101   : > { %v672_v24 = vpop.eup %671  ;;  %603 = vmatpush3.bf16.msra.mxu1 %v600_v22 }
 0x102   : > { %v604_v25 = vpack.c.bf16 %v670_v23, %v672_v24 }
 0x104   : > { %605 = vmatprep.subr.bf16.mxu1 %v604_v25 }
 0x105   : > { %607 = vmatpush3.bf16.msra.mxu1 %v604_v25 }
 0x108   : > { %584 = vmatmul.mubr.msk.f32.vlgmr.msra.gmra.mrb[0].mxu1 %vm283_vm1, %v140_v26 }
 0x109   : > { %586 = vmatprep.mubr.msk.f32.mxu1 %vm283_vm1, %v141_v27 }
 0x10c   : > { %587 = vmatmul.mubr.msk.f32.gmra.mrb[2].mxu1 %vm283_vm1, %v142_v28 }
 0x1db   : > { %v585_v35 = vpop.f32.mrb[0].mxu1 }
 0x1dc   : > { %v368_v36 = vadd.f32 %v585_v35, %v273_v34  ;;  %v362_v37 = vpop.f32.mrb[1].mxu1 }
 0x1dd   : > { %v363_v38 = vadd.f32 %v362_v37, %v269_v33 }
 0x1de   : > { %673 = vtanh.f32 %v368_v36 }
 0x1df   : > { %675 = vtanh.f32 %v363_v38  ;;  %v588_v40 = vpop.f32.mrb[2].mxu1 }
 0x1e0   : > { %v378_v42 = vadd.f32 %v588_v40, %v281_v39  ;;  %v372_v43 = vpop.f32.mrb[3].mxu1 }
 0x1e1   : > { %v373_v44 = vadd.f32 %v372_v43, %v277_v41 }
 0x1e2   : > { %677 = vtanh.f32 %v378_v42 }
 0x1e3   : > { %679 = vtanh.f32 %v373_v44 }
 0x1e8   : > { %v674_v45 = vpop.eup %673 }
 0x1e9   : > { %v676_v46 = vpop.eup %675 }
 0x1ea   : > { %v609_v47 = vpack.c.bf16 %v674_v45, %v676_v46 }
 0x1ec   : > { %v678_v48 = vpop.eup %677  ;;  %610 = vmatpush3.bf16.msra.mxu0 %v609_v47 }
 0x1ed   : > { %v680_v49 = vpop.eup %679  ;;  %611 = vmatprep.subr.bf16.mxu0 %v747_v29 }
 0x1ee   : > { %v612_v50 = vpack.c.bf16 %v678_v48, %v680_v49 }
 0x1f0   : > { %613 = vmatpush3.bf16.msra.mxu0 %v612_v50 }
 0x1f3   : > { %598 = vmatmul.mubr.msk.f32.vlgmr.msra.gmra.mrb[4].mxu0 %vm283_vm1, %v147_v51 }
 0x2c6   : > { %v459_v53 = vpop.f32.mrb[4].mxu0 }
 0x2c7   : > { %v460_v54 = vadd.f32 %v459_v53, %v388_v52  ;;  %v599_v55 = vpop.f32.mrb[5].mxu0 }
 0x2c9   : > { %463 = vst [vmem:[%s133_s29] sm:$0x1] %v460_v54 }
 0x2ca   : > { %694 = shalt.err (!%p691_p3)
}
 0x2cb   : > { %s695_s16 = scalar_lea.hbm %s864_s5, 16  ;;  %s699_s22 = scalar_lea.hbm %s908_s2, 32 }
 0x2cc   : > { %p696_p4 = scmp.ne.s32.totalorder %s864_s5, %s695_s16  ;;  %p700_p9 = scmp.lt.u32.totalorder %s864_s5, %s908_s2 }
 0x2cd   : > { %p701_p10 = scmp.lt.u32.totalorder %s699_s22, %s695_s16  ;;  %p703_p12 = scmp.lt.u32.totalorder %s695_s16, %s864_s5 }
 0x2ce   : > { %p697_p7 = pnand %p696_p4, %p805_p5 }
 0x2cf   : > { %p702_p11 = por %p701_p10, %p700_p9 }
 0x2d0   : > { %p698_p8 = pneg %p697_p7 }
 0x2d1   : > { %p704_p13 = por %p703_p12, %p702_p11 }
 0x2d3   : > { %p705_p0 = pnand %p704_p13, %p698_p8 }
 0x2d5   : > { %708 = shalt.err (!%p705_p0)
}
 0x2d6   : > { %614 = dma.vmem_to_hbm [thread:$0]  (%p805_p5), %s866_s30, 16, %s864_s5, %s465_s6  }
 0x2d7 PF: > { %p620_p1 = scmp.ge.s32.totalorder %s743_s12, 2  ;;  %s489_s25 = sand.u32 1, %s731_s9  }
 0x2d8   : > { %s490_s26 = scalar_lea.sflag [#allocation3], %s489_s25 }
 0x2d9   : > { %p617_p2 = pnand %p620_p1, %p809_p6 }
 0x2db   : > { %726 = dma.done.wait (!%p617_p2), %s490_s26, 16  }
 0x2dc   : > { %728 = vsyncadd (!%p617_p2), %s490_s26, 4294967280  ;;  %p12_p3 = scmp.ge.s32.totalorder %s792_s15, 4   ;;  %s911_s9 = smov %s735_s10 }
 0x2dd   : > { %s912_s10 = smov %s739_s11  ;;  %s913_s11 = smov %s803_s18 }
 0x2de   : > { %s914_s12 = smov %s792_s15  ;;  %14 = sbr.rel (!%p12_p3) target bundleno = 3 (0x3), region = 63 }
 0x2e5   :  { %494 = vsyncpa [#allocation3], 1 }
 0x2e6   :  { %496 = vsyncpa [#allocation3 + $0x1], 1 }

</bundles_post_ra>
